<compile_context>
chip_gen: v7x
topology: tpu7x:2x2x1
jax: 0.10.0
libtpu: 0.0.40
codegen_flags: <defaults>
</compile_context>

<pallas_src>
import functools

import jax
import jax.numpy as jnp
from jax.experimental import pallas as pl
from jax.experimental.pallas import tpu as pltpu


def _round_up(n: int, m: int) -> int:
    return ((n + m - 1) // m) * m


def coupling_kernel(
    x_ref, mask_ref,
    w1_ref, b1_ref, w2_ref, b2_ref, w3_ref, b3_ref,
    y_ref, logdet_ref,
    *, reverse: bool,
):
    x = x_ref[...].astype(jnp.float32)            # (TB, D)
    mask = mask_ref[...].astype(jnp.float32)      # (1, D) -> broadcasts over batch
    x_masked = x * mask

    # Fused scale|translate MLP: 3 MXU matmuls instead of 6.
    h1 = jnp.dot(x_masked, w1_ref[...], preferred_element_type=jnp.float32) + b1_ref[...]
    h1 = jnp.maximum(h1, 0.0)                     # ReLU
    h2 = jnp.dot(h1, w2_ref[...], preferred_element_type=jnp.float32) + b2_ref[...]
    h2 = jnp.maximum(h2, 0.0)                     # ReLU
    out = jnp.dot(h2, w3_ref[...], preferred_element_type=jnp.float32) + b3_ref[...]  # (TB, 2D)

    D = x.shape[-1]
    scale = jnp.tanh(out[:, :D])                  # scale_net output (with Tanh)
    translate = out[:, D:]                        # translate_net output

    inv_mask = 1.0 - mask
    if not reverse:
        y = x_masked + inv_mask * (x * jnp.exp(scale) + translate)
        log_det = jnp.sum(inv_mask * scale, axis=-1, keepdims=True)
    else:
        y = x_masked + inv_mask * (x - translate) * jnp.exp(-scale)
        log_det = -jnp.sum(inv_mask * scale, axis=-1, keepdims=True)

    y_ref[...] = y.astype(y_ref.dtype)
    logdet_ref[...] = log_det.astype(logdet_ref.dtype)
    # TODO(synk): for very large TB on v5e a lane-dense (128-wide) output view for
    # y/log_det would avoid masked vst.msk stores; unnecessary at these sizes.


def coupling_layer_forward(x, mask, packed, *, reverse: bool = False, tb: int = 1024):
    """x: (B, D) float32, mask: (D,), packed: dict of fused weight arrays."""
    B, D = x.shape
    mask2d = mask.reshape(1, D).astype(jnp.float32)

    # Batch tile: multiple of 8 sublanes, capped at the (padded) batch size.
    TB = _round_up(min(int(tb), _round_up(B, 8)), 8)
    Bp = _round_up(B, TB)                         # pad tail instead of dropping it
    if Bp != B:
        x = jnp.pad(x, ((0, Bp - B), (0, 0)))
    grid = (Bp // TB,)

    def batch_map(i):
        return (i, 0)

    def full_map(i):
        return (0, 0)

    weight_names = ["w1", "b1", "w2", "b2", "w3", "b3"]

    in_specs = [
        pl.BlockSpec((TB, D), batch_map),         # x tile (streamed / pipelined)
        pl.BlockSpec((1, D), full_map),           # mask (grid-invariant)
    ] + [pl.BlockSpec(packed[name].shape, full_map) for name in weight_names]

    out_specs = [
        pl.BlockSpec((TB, D), batch_map),         # y tile
        pl.BlockSpec((TB, 1), batch_map),         # log_det (kept 2D, squeezed outside)
    ]

    y, logdet = pl.pallas_call(
        functools.partial(coupling_kernel, reverse=reverse),
        grid=grid,
        in_specs=in_specs,
        out_specs=out_specs,
        out_shape=(
            jax.ShapeDtypeStruct((Bp, D), x.dtype),
            jax.ShapeDtypeStruct((Bp, 1), jnp.float32),
        ),
        compiler_params=pltpu.CompilerParams(
            dimension_semantics=("parallel",),        # batch tiles split across TCs
            vmem_limit_bytes=32 * 1024 * 1024,        # safe on v5e/v6e/v7x
        ),
    )(x, mask2d, *[packed[name] for name in weight_names])

    return y[:B], logdet[:B, 0]                   # log_det shape (B,), like torch


def init_params(key, input_dim, hidden_dim):
    """Deterministic init mimicking nn.Linear default (uniform(-1/sqrt(fan_in)))."""
    def linear(k, fan_in, fan_out):
        kw, kb = jax.random.split(k)
        bound = 1.0 / jnp.sqrt(fan_in)
        w = jax.random.uniform(kw, (fan_in, fan_out), jnp.float32, -bound, bound)
        b = jax.random.uniform(kb, (1, fan_out), jnp.float32, -bound, bound)
        return w, b

    keys = jax.random.split(key, 6)
    params = {}
    params["sw1"], params["sb1"] = linear(keys[0], input_dim, hidden_dim)
    params["sw2"], params["sb2"] = linear(keys[1], hidden_dim, hidden_dim)
    params["sw3"], params["sb3"] = linear(keys[2], hidden_dim, input_dim)
    params["tw1"], params["tb1"] = linear(keys[3], input_dim, hidden_dim)
    params["tw2"], params["tb2"] = linear(keys[4], hidden_dim, hidden_dim)
    params["tw3"], params["tb3"] = linear(keys[5], hidden_dim, input_dim)
    return params


def pack_params(p):
    """Fuse scale_net + translate_net into one 3-layer MLP (done once, offline)."""
    D, H = p["sw1"].shape
    zHH = jnp.zeros((H, H), jnp.float32)
    zHD = jnp.zeros((H, D), jnp.float32)
    return {
        "w1": jnp.concatenate([p["sw1"], p["tw1"]], axis=1),          # (D, 2H)
        "b1": jnp.concatenate([p["sb1"], p["tb1"]], axis=1),          # (1, 2H)
        "w2": jnp.block([[p["sw2"], zHH], [zHH, p["tw2"]]]),          # (2H, 2H)
        "b2": jnp.concatenate([p["sb2"], p["tb2"]], axis=1),          # (1, 2H)
        "w3": jnp.block([[p["sw3"], zHD], [zHD, p["tw3"]]]),          # (2H, 2D)
        "b3": jnp.concatenate([p["sb3"], p["tb3"]], axis=1),          # (1, 2D)
    }


def reference_forward(x, mask, params, reverse=False):
    """Pure-JAX reference matching the PyTorch forward (both branches)."""
    def mlp(h, w1, b1, w2, b2, w3, b3):
        h = jnp.maximum(h @ w1 + b1, 0.0)
        h = jnp.maximum(h @ w2 + b2, 0.0)
        return h @ w3 + b3

    x_masked = x * mask
    scale = jnp.tanh(mlp(x_masked, params["sw1"], params["sb1"], params["sw2"],
                         params["sb2"], params["sw3"], params["sb3"]))
    translate = mlp(x_masked, params["tw1"], params["tb1"], params["tw2"],
                    params["tb2"], params["tw3"], params["tb3"])
    if not reverse:
        y = x_masked + (1.0 - mask) * (x * jnp.exp(scale) + translate)
        log_det = jnp.sum((1.0 - mask) * scale, axis=-1)
    else:
        y = x_masked + (1.0 - mask) * (x - translate) * jnp.exp(-scale)
        log_det = -jnp.sum((1.0 - mask) * scale, axis=-1)
    return y, log_det


if __name__ == "__main__":
    # Ragged batch on purpose: exercises tail padding (500 -> 512) and gives a
    # 4-step grid with TB=128 so pipelining / megacore sharding actually happen.
    B, D, H = 500, 16, 32
    TB = 128

    key = jax.random.PRNGKey(0)
    kx, kp = jax.random.split(key)

    x = jax.random.normal(kx, (B, D), dtype=jnp.float32)
    # Alternating binary mask, as typically used with coupling layers.
    mask = (jnp.arange(D) % 2).astype(jnp.float32)
    params = init_params(kp, D, H)
    packed = pack_params(params)

    # Forward branch.
    y, log_det = coupling_layer_forward(x, mask, packed, reverse=False, tb=TB)
    y = jax.block_until_ready(y)
    log_det = jax.block_until_ready(log_det)

    y_ref, ld_ref = reference_forward(x, mask, params, reverse=False)
    assert y.shape == (B, D) and log_det.shape == (B,)
    assert jnp.allclose(y, y_ref, atol=1e-4, rtol=1e-4)
    assert jnp.allclose(log_det, ld_ref, atol=1e-4, rtol=1e-4)

    # Reverse branch: must invert the forward and match the reference.
    x_rec, ld_rev = coupling_layer_forward(y, mask, packed, reverse=True, tb=TB)
    x_rec = jax.block_until_ready(x_rec)
    ld_rev = jax.block_until_ready(ld_rev)

    xr_ref, ldr_ref = reference_forward(y_ref, mask, params, reverse=True)
    assert jnp.allclose(x_rec, xr_ref, atol=1e-4, rtol=1e-4)
    assert jnp.allclose(ld_rev, ldr_ref, atol=1e-4, rtol=1e-4)
    assert jnp.allclose(x_rec, x, atol=1e-3, rtol=1e-3)   # round-trip invertibility

    print("KERNEL_OK")
</pallas_src>

<mosaic_0001>
module attributes {stable_mosaic.version = 11 : i64} {
  func.func @coupling_kernel(%arg0: i32, %arg1: memref<128x16xf32, #tpu.memory_space<vmem>>, %arg2: memref<1x16xf32, #tpu.memory_space<vmem>>, %arg3: memref<16x64xf32, #tpu.memory_space<vmem>>, %arg4: memref<1x64xf32, #tpu.memory_space<vmem>>, %arg5: memref<64x64xf32, #tpu.memory_space<vmem>>, %arg6: memref<1x64xf32, #tpu.memory_space<vmem>>, %arg7: memref<64x32xf32, #tpu.memory_space<vmem>>, %arg8: memref<1x32xf32, #tpu.memory_space<vmem>>, %arg9: memref<128x16xf32, #tpu.memory_space<vmem>>, %arg10: memref<128x1xf32, #tpu.memory_space<vmem>>) attributes {dimension_semantics = [#tpu.dimension_semantics<parallel>], iteration_bounds = array<i64: 4>, scalar_prefetch = 0 : i64, scratch_operands = 0 : i64, tpu.core_type = #tpu.core_type<tc>, window_params = [{transform_indices = @transform_0, window_bounds = array<i64: 128, 16>}, {pipeline_mode = #tpu.pipeline_mode<synchronous>, transform_indices = @transform_1, window_bounds = array<i64: 1, 16>}, {pipeline_mode = #tpu.pipeline_mode<synchronous>, transform_indices = @transform_2, window_bounds = array<i64: 16, 64>}, {pipeline_mode = #tpu.pipeline_mode<synchronous>, transform_indices = @transform_3, window_bounds = array<i64: 1, 64>}, {pipeline_mode = #tpu.pipeline_mode<synchronous>, transform_indices = @transform_4, window_bounds = array<i64: 64, 64>}, {pipeline_mode = #tpu.pipeline_mode<synchronous>, transform_indices = @transform_5, window_bounds = array<i64: 1, 64>}, {pipeline_mode = #tpu.pipeline_mode<synchronous>, transform_indices = @transform_6, window_bounds = array<i64: 64, 32>}, {pipeline_mode = #tpu.pipeline_mode<synchronous>, transform_indices = @transform_7, window_bounds = array<i64: 1, 32>}, {transform_indices = @transform_8, window_bounds = array<i64: 128, 16>}, {transform_indices = @transform_9, window_bounds = array<i64: 128, 1>}]} {
    %c0 = arith.constant 0 : index
    %c0_0 = arith.constant 0 : index
    %0 = vector.load %arg1[%c0, %c0_0] : memref<128x16xf32, #tpu.memory_space<vmem>>, vector<128x16xf32>
    %c0_1 = arith.constant 0 : index
    %c0_2 = arith.constant 0 : index
    %1 = vector.load %arg2[%c0_1, %c0_2] : memref<1x16xf32, #tpu.memory_space<vmem>>, vector<1x16xf32>
    %2 = vector.broadcast %1 : vector<1x16xf32> to vector<128x16xf32>
    %3 = arith.mulf %0, %2 : vector<128x16xf32>
    %c0_3 = arith.constant 0 : index
    %c0_4 = arith.constant 0 : index
    %4 = vector.load %arg3[%c0_3, %c0_4] : memref<16x64xf32, #tpu.memory_space<vmem>>, vector<16x64xf32>
    %cst = arith.constant dense<0.000000e+00> : vector<128x64xf32>
    %5 = tpu.matmul %3, %4, %cst {dimension_numbers = #tpu.dot_dimension_numbers<[1], [0], [0], [1], [0, 0, 1, 1], [], []>} : vector<128x16xf32>, vector<16x64xf32>, vector<128x64xf32> -> vector<128x64xf32>
    %c0_5 = arith.constant 0 : index
    %c0_6 = arith.constant 0 : index
    %6 = vector.load %arg4[%c0_5, %c0_6] : memref<1x64xf32, #tpu.memory_space<vmem>>, vector<1x64xf32>
    %7 = vector.broadcast %6 : vector<1x64xf32> to vector<128x64xf32>
    %8 = arith.addf %5, %7 : vector<128x64xf32>
    %cst_7 = arith.constant 0.000000e+00 : f32
    %9 = vector.broadcast %cst_7 : f32 to vector<128x64xf32>
    %10 = arith.maximumf %8, %9 : vector<128x64xf32>
    %c0_8 = arith.constant 0 : index
    %c0_9 = arith.constant 0 : index
    %11 = vector.load %arg5[%c0_8, %c0_9] : memref<64x64xf32, #tpu.memory_space<vmem>>, vector<64x64xf32>
    %cst_10 = arith.constant dense<0.000000e+00> : vector<128x64xf32>
    %12 = tpu.matmul %10, %11, %cst_10 {dimension_numbers = #tpu.dot_dimension_numbers<[1], [0], [0], [1], [0, 0, 1, 1], [], []>} : vector<128x64xf32>, vector<64x64xf32>, vector<128x64xf32> -> vector<128x64xf32>
    %c0_11 = arith.constant 0 : index
    %c0_12 = arith.constant 0 : index
    %13 = vector.load %arg6[%c0_11, %c0_12] : memref<1x64xf32, #tpu.memory_space<vmem>>, vector<1x64xf32>
    %14 = vector.broadcast %13 : vector<1x64xf32> to vector<128x64xf32>
    %15 = arith.addf %12, %14 : vector<128x64xf32>
    %cst_13 = arith.constant 0.000000e+00 : f32
    %16 = vector.broadcast %cst_13 : f32 to vector<128x64xf32>
    %17 = arith.maximumf %15, %16 : vector<128x64xf32>
    %c0_14 = arith.constant 0 : index
    %c0_15 = arith.constant 0 : index
    %18 = vector.load %arg7[%c0_14, %c0_15] : memref<64x32xf32, #tpu.memory_space<vmem>>, vector<64x32xf32>
    %cst_16 = arith.constant dense<0.000000e+00> : vector<128x32xf32>
    %19 = tpu.matmul %17, %18, %cst_16 {dimension_numbers = #tpu.dot_dimension_numbers<[1], [0], [0], [1], [0, 0, 1, 1], [], []>} : vector<128x64xf32>, vector<64x32xf32>, vector<128x32xf32> -> vector<128x32xf32>
    %c0_17 = arith.constant 0 : index
    %c0_18 = arith.constant 0 : index
    %20 = vector.load %arg8[%c0_17, %c0_18] : memref<1x32xf32, #tpu.memory_space<vmem>>, vector<1x32xf32>
    %21 = vector.broadcast %20 : vector<1x32xf32> to vector<128x32xf32>
    %22 = arith.addf %19, %21 : vector<128x32xf32>
    %23 = vector.extract_strided_slice %22 {offsets = [0, 0], sizes = [128, 16], strides = [1, 1]} : vector<128x32xf32> to vector<128x16xf32>
    %24 = math.tanh %23 : vector<128x16xf32>
    %25 = vector.extract_strided_slice %22 {offsets = [0, 16], sizes = [128, 16], strides = [1, 1]} : vector<128x32xf32> to vector<128x16xf32>
    %cst_19 = arith.constant 1.000000e+00 : f32
    %26 = vector.broadcast %cst_19 : f32 to vector<1x16xf32>
    %27 = arith.subf %26, %1 : vector<1x16xf32>
    %28 = math.exp %24 : vector<128x16xf32>
    %29 = arith.mulf %0, %28 : vector<128x16xf32>
    %30 = arith.addf %29, %25 : vector<128x16xf32>
    %31 = vector.broadcast %27 : vector<1x16xf32> to vector<128x16xf32>
    %32 = arith.mulf %31, %30 : vector<128x16xf32>
    %33 = arith.addf %3, %32 : vector<128x16xf32>
    %34 = vector.broadcast %27 : vector<1x16xf32> to vector<128x16xf32>
    %35 = arith.mulf %34, %24 : vector<128x16xf32>
    %cst_20 = arith.constant dense<0.000000e+00> : vector<128xf32>
    %36 = vector.multi_reduction <add>, %35, %cst_20 [1] : vector<128x16xf32> to vector<128xf32>
    %37 = vector.shape_cast %36 : vector<128xf32> to vector<128x1xf32>
    %c0_21 = arith.constant 0 : index
    %c0_22 = arith.constant 0 : index
    %38 = vector.load %arg9[%c0_21, %c0_22] : memref<128x16xf32, #tpu.memory_space<vmem>>, vector<128x16xf32>
    tpu.vector_store %arg9[%c0_21, %c0_22], %33 {strides = array<i32>} : memref<128x16xf32, #tpu.memory_space<vmem>>, vector<128x16xf32>,
    %c0_23 = arith.constant 0 : index
    %c0_24 = arith.constant 0 : index
    %39 = vector.load %arg10[%c0_23, %c0_24] : memref<128x1xf32, #tpu.memory_space<vmem>>, vector<128x1xf32>
    tpu.vector_store %arg10[%c0_23, %c0_24], %37 {strides = array<i32>} : memref<128x1xf32, #tpu.memory_space<vmem>>, vector<128x1xf32>,
    return
  }
  func.func @transform_0(%arg0: i32) -> (i32, i32) {
    %c0_i32 = arith.constant 0 : i32
    %c0_i32_0 = arith.constant 0 : i32
    return %arg0, %c0_i32 : i32, i32
  }
  func.func @transform_1(%arg0: i32) -> (i32, i32) {
    %c0_i32 = arith.constant 0 : i32
    %c0_i32_0 = arith.constant 0 : i32
    %c0_i32_1 = arith.constant 0 : i32
    return %c0_i32, %c0_i32_0 : i32, i32
  }
  func.func @transform_2(%arg0: i32) -> (i32, i32) {
    %c0_i32 = arith.constant 0 : i32
    %c0_i32_0 = arith.constant 0 : i32
    %c0_i32_1 = arith.constant 0 : i32
    return %c0_i32, %c0_i32_0 : i32, i32
  }
  func.func @transform_3(%arg0: i32) -> (i32, i32) {
    %c0_i32 = arith.constant 0 : i32
    %c0_i32_0 = arith.constant 0 : i32
    %c0_i32_1 = arith.constant 0 : i32
    return %c0_i32, %c0_i32_0 : i32, i32
  }
  func.func @transform_4(%arg0: i32) -> (i32, i32) {
    %c0_i32 = arith.constant 0 : i32
    %c0_i32_0 = arith.constant 0 : i32
    %c0_i32_1 = arith.constant 0 : i32
    return %c0_i32, %c0_i32_0 : i32, i32
  }
  func.func @transform_5(%arg0: i32) -> (i32, i32) {
    %c0_i32 = arith.constant 0 : i32
    %c0_i32_0 = arith.constant 0 : i32
    %c0_i32_1 = arith.constant 0 : i32
    return %c0_i32, %c0_i32_0 : i32, i32
  }
  func.func @transform_6(%arg0: i32) -> (i32, i32) {
    %c0_i32 = arith.constant 0 : i32
    %c0_i32_0 = arith.constant 0 : i32
    %c0_i32_1 = arith.constant 0 : i32
    return %c0_i32, %c0_i32_0 : i32, i32
  }
  func.func @transform_7(%arg0: i32) -> (i32, i32) {
    %c0_i32 = arith.constant 0 : i32
    %c0_i32_0 = arith.constant 0 : i32
    %c0_i32_1 = arith.constant 0 : i32
    return %c0_i32, %c0_i32_0 : i32, i32
  }
  func.func @transform_8(%arg0: i32) -> (i32, i32) {
    %c0_i32 = arith.constant 0 : i32
    %c0_i32_0 = arith.constant 0 : i32
    return %arg0, %c0_i32 : i32, i32
  }
  func.func @transform_9(%arg0: i32) -> (i32, i32) {
    %c0_i32 = arith.constant 0 : i32
    %c0_i32_0 = arith.constant 0 : i32
    return %arg0, %c0_i32 : i32, i32
  }
}

</mosaic_0001>

<bundles_post_ra>
// kernel: tpu_custom_call.1
= control target key start
LH: loop header
LB: loop body
LE: loop exit
PB: predicated region body
PF: predicated region fallthrough
CT: control target
= control target key end

     0   :  { %s1819_s30 = smov 0   ;;  %s2311_s0 = inlined_call_operand.vmem [shape: f32[512,16], index: 0, kind: input, shape index: {}]   ;;  %s2312_s1 = inlined_call_operand.vmem [shape: f32[1,16], index: 1, kind: input, shape index: {}]   ;;  %s2313_s2 = inlined_call_operand.vmem [shape: f32[16,64], index: 2, kind: input, shape index: {}]   ;;  %s2314_s3 = inlined_call_operand.vmem [shape: f32[1,64], index: 3, kind: input, shape index: {}]   ;;  %s2315_s4 = inlined_call_operand.vmem [shape: f32[64,64], index: 4, kind: input, shape index: {}]   ;;  %s2316_s5 = inlined_call_operand.vmem [shape: f32[1,64], index: 5, kind: input, shape index: {}]   ;;  %s2317_s6 = inlined_call_operand.vmem [shape: f32[64,32], index: 6, kind: input, shape index: {}]   ;;  %s2318_s7 = inlined_call_operand.vmem [shape: f32[1,32], index: 7, kind: input, shape index: {}]   ;;  %s2319_s8 = inlined_call_operand.vmem [shape: f32[512,16], index: 8, kind: output, shape index: {0}]   ;;  %s2320_s9 = inlined_call_operand.vmem [shape: f32[512,1], index: 9, kind: output, shape index: {1}]  }
   0x1 LB: > { %s1411_s10 = sadd.s32 4294967295, %s1766_s30   ;;  %p1415_p0 = scmp.ge.s32.totalorder %s1766_s30, 1  ;;  %s1766_s30 = sphi %s1819_s30, %s20_s30  }
   0x2   : > { %p291_p1 = scmp.lt.s32.totalorder %s1766_s30, 5 }
   0x4   : > { %p292_p2 = pnand %p1415_p0, %p291_p1 }
   0x5   : > { %v389_v0 = vld [vmem:[%s2313_s2] sm:$0xff] (!%p292_p2)  ;;  %v390_v1 = vld [vmem:[%s2313_s2 + $0x8] sm:$0xff] (!%p292_p2)  ;;  %s1416_s15 = sshll.u32 (!%p292_p2), %s1411_s10, 4  ;;  %v368_v2 = vlaneseq (!%p292_p2)  ;;  %vm398_vm0 = vcmask (!%p292_p2), 130048   ;;  %v610_v20 = vld [vmem:[%s2315_s4 + $0x10] sm:$0xff] (!%p292_p2)  ;;  %vm623_vm1 = vcmask (!%p292_p2), 523264  }
   0x6   : > { %295 = sbr.rel (%p292_p2) target bundleno = 1051 (0x41b), region = 52  ;;  %v1649_v3 = vpack.c.bf16 (!%p292_p2), %v390_v1, %v389_v0  ;;  %p333_p3 = scmp.lt.s32.totalorder (!%p292_p2), %s1416_s15, 63  ;;  %v366_v4 = vld [vmem:[%s2312_s1] sm:$0x1] (!%p292_p2)  ;;  %v609_v6 = vld [vmem:[%s2315_s4 + $0x8] sm:$0xff] (!%p292_p2)  ;;  %v611_v21 = vld [vmem:[%s2315_s4 + $0x18] sm:$0xff] (!%p292_p2) }
   0x7   : > { %v608_v5 = vld [vmem:[%s2315_s4] sm:$0xff] (!%p292_p2)  ;;  %v369_v7 = vshrl.u32 (!%p292_p2), %v368_v2, 7  ;;  %v1057_v8 = vsub.f32 (!%p292_p2), 1.0, %v366_v4  ;;  %v1657_v32 = vpack.c.bf16 (!%p292_p2), %v611_v21, %v610_v20  ;;  %v613_v36 = vld [vmem:[%s2315_s4 + $0x28] sm:$0xff] (!%p292_p2)  ;;  %v614_v51 = vld [vmem:[%s2315_s4 + $0x30] sm:$0xff] (!%p292_p2)  ;;  %s1768_s21 = smov (!%p292_p2), 112  }
   0x8   : > { %v1653_v9 = vpack.c.bf16 (!%p292_p2), %v609_v6, %v608_v5  ;;  %1650 = vmatprep.subr.bf16.mxu0 (!%p292_p2), %v1649_v3  ;;  %1685 = vmatprep.subr.bf16.mxu1 (!%p292_p2), %v1649_v3  ;;  %v612_v35 = vld [vmem:[%s2315_s4 + $0x20] sm:$0xff] (!%p292_p2)  ;;  %v615_v52 = vld [vmem:[%s2315_s4 + $0x38] sm:$0xff] (!%p292_p2)  ;;  %v834_v55 = vld [vmem:[%s2317_s6 + $0x8] sm:$0xff] (!%p292_p2)  ;;  %vm1304_vm2 = vcmask (!%p292_p2), 7168  }
   0x9   : > { %1652 = vmatpush3.bf16.msra.mxu0 (!%p292_p2), %v1649_v3  ;;  %v370_v10 = vsub.s32 (!%p292_p2), 0, %v369_v7  ;;  %1686 = vmatpush3.bf16.msra.mxu1 (!%p292_p2), %v1649_v3  ;;  %v1661_v43 = vpack.c.bf16 (!%p292_p2), %v613_v36, %v612_v35  ;;  %v1665_v53 = vpack.c.bf16 (!%p292_p2), %v615_v52, %v614_v51  ;;  %v833_v54 = vld [vmem:[%s2317_s6] sm:$0xff] (!%p292_p2)  ;;  %v835_v57 = vld [vmem:[%s2317_s6 + $0x10] sm:$0xff] (!%p292_p2)  ;;  %v836_v58 = vld [vmem:[%s2317_s6 + $0x18] sm:$0xff] (!%p292_p2) }
   0xa   : > { %1654 = vmatprep.subr.bf16.mxu1 (!%p292_p2), %v1653_v9  ;;  %v1669_v56 = vpack.c.bf16 (!%p292_p2), %v834_v55, %v833_v54  ;;  %v837_v59 = vld [vmem:[%s2317_s6 + $0x20] sm:$0xff] (!%p292_p2)  ;;  %v1673_v60 = vpack.c.bf16 (!%p292_p2), %v836_v58, %v835_v57  ;;  %v838_v61 = vld [vmem:[%s2317_s6 + $0x28] sm:$0xff] (!%p292_p2) }
   0xb   : > { %v371_v11 = vrot.slane (!%p292_p2), %v366_v4, %v370_v10  ;;  %v1850_v12 = vrot.slane (!%p292_p2), %v1057_v8, %v370_v10  ;;  %v1677_v62 = vpack.c.bf16 (!%p292_p2), %v838_v61, %v837_v59  ;;  %v1422_v63 = vld [vmem:[%s2314_s3] ss:$0 sm:$0xff] (!%p292_p2) }
   0xc   : > { %1670 = vmatprep.subr.bf16.mxu0 (!%p292_p2), %v1669_v56 }
   0xd   : > { %s2322_s15 = smov (!%p333_p3, %s1416_s15), 63 }
   0xe   : > { %s1842_s22 = sshll.u32 %s2322_s15, 3 }
   0xf   : > { %s1848_s25 = scalar_lea.vmem %s2311_s0, %s1842_s22  ;;  %s2196_s28 = scalar_lea.vmem %s2320_s9, %s1842_s22 }
  0x10   : > { %v1853_v13 = vld [vmem:[%s1848_s25] sm:$0xff]  ;;  %v1856_v14 = vld [vmem:[%s1848_s25 + $0x8] sm:$0xff]  ;;  %v1859_v15 = vld [vmem:[%s1848_s25 + $0x10] sm:$0xff] }
  0x11   : > { %v1862_v16 = vmul.f32 %v371_v11, %v1853_v13  ;;  %v1865_v17 = vmul.f32 %v371_v11, %v1856_v14  ;;  %v1868_v18 = vmul.f32 %v371_v11, %v1859_v15  ;;  %v1871_v19 = vld [vmem:[%s1848_s25 + $0x18] sm:$0xff]  ;;  %v1880_v22 = vld [vmem:[%s1848_s25 + $0x20] sm:$0xff]  ;;  %v1891_v25 = vld [vmem:[%s1848_s25 + $0x48] sm:$0xff] }
  0x12   : > { %v1883_v23 = vld [vmem:[%s1848_s25 + $0x40] sm:$0xff]  ;;  %v1894_v26 = vld [vmem:[%s1848_s25 + $0x50] sm:$0xff]  ;;  %v1897_v27 = vld [vmem:[%s1848_s25 + $0x58] sm:$0xff]  ;;  %v1902_v28 = vmul.f32 %v371_v11, %v1871_v19  ;;  %v1905_v29 = vmul.f32 %v371_v11, %v1891_v25  ;;  %v1916_v33 = vmul.f32 %v371_v11, %v1880_v22 }
  0x13   : > { %1545 = vmatprep.mubr.msk.f32.mxu0 %vm398_vm0, %v1862_v16  ;;  %v1888_v24 = vmul.f32 %v371_v11, %v1883_v23  ;;  %v1908_v30 = vmul.f32 %v371_v11, %v1894_v26  ;;  %v1911_v31 = vld [vmem:[%s1848_s25 + $0x60] sm:$0xff]  ;;  %v1919_v34 = vld [vmem:[%s1848_s25 + $0x28] sm:$0xff]  ;;  %v1930_v37 = vld [vmem:[%s1848_s25 + $0x30] sm:$0xff]  ;;  %v1935_v38 = vmul.f32 %v371_v11, %v1897_v27 }
  0x14   : > { %1546 = vmatmul.mubr.msk.f32.vlgmr.msra.gmra.mrb[0].mxu0 %vm398_vm0, %v1865_v17  ;;  %v1940_v39 = vmul.f32 %v371_v11, %v1911_v31  ;;  %v1943_v40 = vld [vmem:[%s1848_s25 + $0x68] sm:$0xff]  ;;  %v1948_v41 = vmul.f32 %v371_v11, %v1919_v34  ;;  %v1951_v42 = vld [vmem:[%s1848_s25 + $0x70] sm:$0xff]  ;;  %v1956_v44 = vmul.f32 %v371_v11, %v1930_v37  ;;  %v1959_v45 = vld [vmem:[%s1848_s25 + $0x38] sm:$0xff] }
  0x15   : > { %1548 = vmatprep.mubr.msk.f32.mxu0 %vm398_vm0, %v1868_v18  ;;  %1557 = vmatprep.mubr.msk.f32.mxu1 %vm398_vm0, %v1888_v24  ;;  %v1964_v46 = vmul.f32 %v371_v11, %v1943_v40  ;;  %v1969_v47 = vmul.f32 %v371_v11, %v1951_v42  ;;  %v1972_v48 = vld [vmem:[%s1848_s25 + $0x78] sm:$0xff]  ;;  %v1977_v49 = vmul.f32 %v371_v11, %v1959_v45  ;;  %s2131_s25 = scalar_lea.vmem %s2319_s8, %s1842_s22 }
  0x16   : > { %1558 = vmatmul.mubr.msk.f32.vlgmr.msra.gmra.mrb[0].mxu1 %vm398_vm0, %v1905_v29  ;;  %v1984_v50 = vmul.f32 %v371_v11, %v1972_v48  ;;  %1672 = vmatpush3.bf16.msra.mxu0 %v1669_v56 }
  0x17   : > { %1560 = vmatprep.mubr.msk.f32.mxu1 %vm398_vm0, %v1908_v30  ;;  %1656 = vmatpush3.bf16.msra.mxu1 %v1653_v9 }
  0x18   : > { %1549 = vmatmul.mubr.msk.f32.gmra.mrb[2].mxu0 %vm398_vm0, %v1902_v28  ;;  %1658 = vmatprep.subr.bf16.mxu1 %v1657_v32 }
  0x19   : > { %1551 = vmatprep.mubr.msk.f32.mxu0 %vm398_vm0, %v1916_v33  ;;  %1674 = vmatprep.subr.bf16.mxu0 %v1673_v60 }
  0x1a   : > { %1561 = vmatmul.mubr.msk.f32.gmra.mrb[2].mxu1 %vm398_vm0, %v1935_v38  ;;  %1676 = vmatpush3.bf16.msra.mxu0 %v1673_v60 }
  0x1b   : > { %1563 = vmatprep.mubr.msk.f32.mxu1 %vm398_vm0, %v1940_v39  ;;  %1660 = vmatpush3.bf16.msra.mxu1 %v1657_v32 }
  0x1c   : > { %1552 = vmatmul.mubr.msk.f32.gmra.mrb[4].mxu0 %vm398_vm0, %v1948_v41  ;;  %1662 = vmatprep.subr.bf16.mxu1 %v1661_v43 }
  0x1d   : > { %1554 = vmatprep.mubr.msk.f32.mxu0 %vm398_vm0, %v1956_v44  ;;  %1678 = vmatprep.subr.bf16.mxu0 %v1677_v62 }
  0x1e   : > { %1564 = vmatmul.mubr.msk.f32.gmra.mrb[4].mxu1 %vm398_vm0, %v1964_v46  ;;  %1680 = vmatpush3.bf16.msra.mxu0 %v1677_v62 }
  0x1f   : > { %1566 = vmatprep.mubr.msk.f32.mxu1 %vm398_vm0, %v1969_v47  ;;  %1664 = vmatpush3.bf16.msra.mxu1 %v1661_v43 }
  0x20   : > { %1555 = vmatmul.mubr.msk.f32.gmra.mrb[6].mxu0 %vm398_vm0, %v1977_v49  ;;  %1666 = vmatprep.subr.bf16.mxu1 %v1665_v53 }
  0x22   : > { %1567 = vmatmul.mubr.msk.f32.gmra.mrb[6].mxu1 %vm398_vm0, %v1984_v50 }
  0x23   : > { %1668 = vmatpush3.bf16.msra.mxu1 %v1665_v53 }
  0xe7   : > { %v1547_v0 = vpop.f32.mrb[0].mxu0 }
  0xe8   : > { %v519_v1 = vadd.f32 %v1547_v0, %v1422_v63  ;;  %v513_v2 = vpop.f32.mrb[1].mxu0 }
  0xe9   : > { %v514_v3 = vadd.f32 %v1422_v63, %v513_v2  ;;  %v1559_v4 = vpop.f32.mrb[0].mxu1 }
  0xea   : > { %v553_v5 = vpop.f32.mrb[1].mxu1  ;;  %v593_v8 = vmax.f32 %v519_v1, 0.0  ;;  %v559_v1 = vadd.f32 %v1559_v4, %v1422_v63 }
  0xeb   : > { %v592_v6 = vmax.f32 %v514_v3, 0.0  ;;  %v1550_v7 = vpop.f32.mrb[2].mxu0  ;;  %v554_v58 = vadd.f32 %v1422_v63, %v553_v5 }
  0xec   : > { %v529_v9 = vadd.f32 %v1550_v7, %v1422_v63  ;;  %v523_v10 = vpop.f32.mrb[3].mxu0 }
  0xed   : > { %v524_v11 = vadd.f32 %v1422_v63, %v523_v10  ;;  %1585 = vmatprep.mubr.msk.f32.mxu1 %vm623_vm1, %v592_v6  ;;  %v1562_v20 = vpop.f32.mrb[2].mxu1  ;;  %v600_v6 = vmax.f32 %v554_v58, 0.0 }
  0xee   : > { %1586 = vmatmul.mubr.msk.f32.vlgmr.msra.gmra.mrb[8].mxu1 %vm623_vm1, %v593_v8  ;;  %v563_v21 = vpop.f32.mrb[3].mxu1  ;;  %v595_v36 = vmax.f32 %v529_v9, 0.0  ;;  %v601_v8 = vmax.f32 %v559_v1, 0.0  ;;  %v569_v5 = vadd.f32 %v1562_v20, %v1422_v63 }
  0xef   : > { %v594_v32 = vmax.f32 %v524_v11, 0.0  ;;  %v1553_v35 = vpop.f32.mrb[4].mxu0  ;;  %v564_v7 = vadd.f32 %v1422_v63, %v563_v21 }
  0xf0   : > { %v539_v43 = vadd.f32 %v1553_v35, %v1422_v63  ;;  %v533_v51 = vpop.f32.mrb[5].mxu0  ;;  %v603_v11 = vmax.f32 %v569_v5, 0.0 }
  0xf1   : > { %v534_v52 = vadd.f32 %v1422_v63, %v533_v51  ;;  %1588 = vmatprep.mubr.msk.f32.mxu1 %vm623_vm1, %v594_v32  ;;  %v1565_v53 = vpop.f32.mrb[4].mxu1  ;;  %v602_v9 = vmax.f32 %v564_v7, 0.0  ;;  %v839_v51 = vld [vmem:[%s2317_s6 + $0x30] sm:$0xff] }
  0xf2   : > { %v597_v54 = vmax.f32 %v539_v43, 0.0  ;;  %1589 = vmatmul.mubr.msk.f32.gmra.mrb[10].mxu1 %vm623_vm1, %v595_v36  ;;  %v573_v55 = vpop.f32.mrb[5].mxu1  ;;  %v579_v32 = vadd.f32 %v1565_v53, %v1422_v63 }
  0xf3   : > { %v596_v56 = vmax.f32 %v534_v52, 0.0  ;;  %v1556_v57 = vpop.f32.mrb[6].mxu0  ;;  %v574_v10 = vadd.f32 %v1422_v63, %v573_v55  ;;  %v840_v52 = vld [vmem:[%s2317_s6 + $0x38] sm:$0xff] }
  0xf4   : > { %v549_v59 = vadd.f32 %v1556_v57, %v1422_v63  ;;  %v543_v60 = vpop.f32.mrb[7].mxu0  ;;  %v605_v21 = vmax.f32 %v579_v32, 0.0  ;;  %v1681_v53 = vpack.c.bf16 %v840_v52, %v839_v51 }
  0xf5   : > { %v544_v61 = vadd.f32 %v1422_v63, %v543_v60  ;;  %1591 = vmatprep.mubr.msk.f32.mxu1 %vm623_vm1, %v596_v56  ;;  %v1568_v62 = vpop.f32.mrb[6].mxu1  ;;  %v604_v4 = vmax.f32 %v574_v10, 0.0 }
  0xf6   : > { %v599_v0 = vmax.f32 %v549_v59, 0.0  ;;  %1592 = vmatmul.mubr.msk.f32.gmra.mrb[12].mxu1 %vm623_vm1, %v597_v54  ;;  %v583_v2 = vpop.f32.mrb[7].mxu1  ;;  %v589_v36 = vadd.f32 %v1568_v62, %v1422_v63  ;;  %1682 = vmatprep.subr.bf16.mxu0 %v1681_v53 }
  0xf7   : > { %v598_v3 = vmax.f32 %v544_v61, 0.0  ;;  %v584_v35 = vadd.f32 %v1422_v63, %v583_v2  ;;  %1684 = vmatpush3.bf16.msra.mxu0 %v1681_v53  ;;  %v1439_v63 = vld [vmem:[%s2316_s5] ss:$0 sm:$0xff] }
  0xf8   : > { %v607_v20 = vmax.f32 %v589_v36, 0.0 }
  0xf9   : > { %1594 = vmatprep.mubr.msk.f32.mxu1 %vm623_vm1, %v598_v3  ;;  %v606_v43 = vmax.f32 %v584_v35, 0.0 }
  0xfa   : > { %1595 = vmatmul.mubr.msk.f32.gmra.mrb[14].mxu1 %vm623_vm1, %v599_v0 }
  0xfb   : > { %1597 = vmatprep.mubr.msk.f32.mxu1 %vm623_vm1, %v600_v6 }
  0xfe   : > { %1598 = vmatmul.mubr.msk.f32.gmra.mrb[16].mxu1 %vm623_vm1, %v601_v8 }
  0xff   : > { %1600 = vmatprep.mubr.msk.f32.mxu1 %vm623_vm1, %v602_v9 }
 0x102   : > { %1601 = vmatmul.mubr.msk.f32.gmra.mrb[18].mxu1 %vm623_vm1, %v603_v11 }
 0x103   : > { %1603 = vmatprep.mubr.msk.f32.mxu1 %vm623_vm1, %v604_v4 }
 0x106   : > { %1604 = vmatmul.mubr.msk.f32.gmra.mrb[20].mxu1 %vm623_vm1, %v605_v21 }
 0x107   : > { %1606 = vmatprep.mubr.msk.f32.mxu1 %vm623_vm1, %v606_v43 }
 0x10a   : > { %1607 = vmatmul.mubr.msk.f32.gmra.mrb[22].mxu1 %vm623_vm1, %v607_v20 }
 0x1c1   : > { %v1587_v54 = vpop.f32.mrb[8].mxu1 }
 0x1c2   : > { %v744_v55 = vadd.f32 %v1587_v54, %v1439_v63  ;;  %v738_v56 = vpop.f32.mrb[9].mxu1 }
 0x1c3   : > { %v739_v57 = vadd.f32 %v1439_v63, %v738_v56 }
 0x1c4   : > { %v818_v60 = vmax.f32 %v744_v55, 0.0 }
 0x1c5   : > { %v817_v58 = vmax.f32 %v739_v57, 0.0  ;;  %v1590_v59 = vpop.f32.mrb[10].mxu1 }
 0x1c6   : > { %v754_v61 = vadd.f32 %v1590_v59, %v1439_v63  ;;  %v748_v62 = vpop.f32.mrb[11].mxu1 }
 0x1c7   : > { %v749_v0 = vadd.f32 %v1439_v63, %v748_v62  ;;  %1625 = vmatprep.mubr.msk.f32.mxu0 %vm623_vm1, %v817_v58 }
 0x1c8   : > { %1626 = vmatmul.mubr.msk.f32.vlgmr.msra.gmra.mrb[8].mxu0 %vm623_vm1, %v818_v60  ;;  %v820_v3 = vmax.f32 %v754_v61, 0.0 }
 0x1c9   : > { %v819_v1 = vmax.f32 %v749_v0, 0.0  ;;  %v1593_v2 = vpop.f32.mrb[12].mxu1 }
 0x1ca   : > { %v764_v6 = vadd.f32 %v1593_v2, %v1439_v63  ;;  %v758_v7 = vpop.f32.mrb[13].mxu1 }
 0x1cb   : > { %v759_v8 = vadd.f32 %v1439_v63, %v758_v7  ;;  %1628 = vmatprep.mubr.msk.f32.mxu0 %vm623_vm1, %v819_v1 }
 0x1cc   : > { %1629 = vmatmul.mubr.msk.f32.gmra.mrb[10].mxu0 %vm623_vm1, %v820_v3  ;;  %v822_v10 = vmax.f32 %v764_v6, 0.0 }
 0x1cd   : > { %v821_v5 = vmax.f32 %v759_v8, 0.0  ;;  %v1596_v9 = vpop.f32.mrb[14].mxu1 }
 0x1ce   : > { %v774_v11 = vadd.f32 %v1596_v9, %v1439_v63  ;;  %v768_v32 = vpop.f32.mrb[15].mxu1 }
 0x1cf   : > { %v769_v4 = vadd.f32 %v1439_v63, %v768_v32  ;;  %1631 = vmatprep.mubr.msk.f32.mxu0 %vm623_vm1, %v821_v5 }
 0x1d0   : > { %v824_v35 = vmax.f32 %v774_v11, 0.0  ;;  %1632 = vmatmul.mubr.msk.f32.gmra.mrb[12].mxu0 %vm623_vm1, %v822_v10  ;;  %v2063_v10 = vld [vmem:[%s2318_s7] ss:$0 sm:$0xff] }
 0x1d1   : > { %v823_v21 = vmax.f32 %v769_v4, 0.0  ;;  %v1599_v36 = vpop.f32.mrb[16].mxu1 }
 0x1d2   : > { %v784_v43 = vadd.f32 %v1599_v36, %v1439_v63  ;;  %v778_v20 = vpop.f32.mrb[17].mxu1 }
 0x1d3   : > { %1634 = vmatprep.mubr.msk.f32.mxu0 %vm623_vm1, %v823_v21  ;;  %v779_v51 = vadd.f32 %v1439_v63, %v778_v20 }
 0x1d4   : > { %1635 = vmatmul.mubr.msk.f32.gmra.mrb[14].mxu0 %vm623_vm1, %v824_v35  ;;  %v826_v52 = vmax.f32 %v784_v43, 0.0 }
 0x1d5   : > { %v825_v53 = vmax.f32 %v779_v51, 0.0  ;;  %v1602_v54 = vpop.f32.mrb[18].mxu1 }
 0x1d6   : > { %v794_v55 = vadd.f32 %v1602_v54, %v1439_v63  ;;  %v788_v56 = vpop.f32.mrb[19].mxu1 }
 0x1d7   : > { %1637 = vmatprep.mubr.msk.f32.mxu0 %vm623_vm1, %v825_v53  ;;  %v789_v57 = vadd.f32 %v1439_v63, %v788_v56 }
 0x1d8   : > { %1638 = vmatmul.mubr.msk.f32.gmra.mrb[16].mxu0 %vm623_vm1, %v826_v52  ;;  %v828_v58 = vmax.f32 %v794_v55, 0.0 }
 0x1d9   : > { %v827_v59 = vmax.f32 %v789_v57, 0.0  ;;  %v1605_v60 = vpop.f32.mrb[20].mxu1 }
 0x1da   : > { %v804_v61 = vadd.f32 %v1605_v60, %v1439_v63  ;;  %v798_v62 = vpop.f32.mrb[21].mxu1 }
 0x1db   : > { %1640 = vmatprep.mubr.msk.f32.mxu0 %vm623_vm1, %v827_v59  ;;  %v799_v0 = vadd.f32 %v1439_v63, %v798_v62 }
 0x1dc   : > { %1641 = vmatmul.mubr.msk.f32.gmra.mrb[18].mxu0 %vm623_vm1, %v828_v58  ;;  %v830_v1 = vmax.f32 %v804_v61, 0.0 }
 0x1dd   : > { %v829_v2 = vmax.f32 %v799_v0, 0.0  ;;  %v1608_v3 = vpop.f32.mrb[22].mxu1 }
 0x1de   : > { %v814_v6 = vadd.f32 %v1608_v3, %v1439_v63  ;;  %v808_v7 = vpop.f32.mrb[23].mxu1 }
 0x1df   : > { %1643 = vmatprep.mubr.msk.f32.mxu0 %vm623_vm1, %v829_v2  ;;  %v809_v8 = vadd.f32 %v1439_v63, %v808_v7 }
 0x1e0   : > { %1644 = vmatmul.mubr.msk.f32.gmra.mrb[20].mxu0 %vm623_vm1, %v830_v1  ;;  %v832_v5 = vmax.f32 %v814_v6, 0.0 }
 0x1e1   : > { %v831_v9 = vmax.f32 %v809_v8, 0.0 }
 0x1e3   : > { %1646 = vmatprep.mubr.msk.f32.mxu0 %vm623_vm1, %v831_v9 }
 0x1e4   : > { %1647 = vmatmul.mubr.msk.f32.gmra.mrb[22].mxu0 %vm623_vm1, %v832_v5 }
 0x29b   : > { %v1627_v11 = vpop.f32.mrb[8].mxu0 }
 0x29c   : > { %v968_v32 = vadd.f32 %v1627_v11, %v2063_v10  ;;  %v962_v4 = vpop.f32.mrb[9].mxu0 }
 0x29d   : > { %v963_v35 = vadd.f32 %v2063_v10, %v962_v4 }
 0x29e   : > { %1124 = vrot.lane.b32.xlu0 %v968_v32, %s1768_s21  ;;  %1696 = vtanh.f32 %v968_v32 }
 0x29f   : > { %v1630_v63 = vpop.f32.mrb[10].mxu0  ;;  %1698 = vtanh.f32 %v963_v35 }
 0x2a0   : > { %v972_v21 = vpop.f32.mrb[11].mxu0  ;;  %v978_v20 = vadd.f32 %v1630_v63, %v2063_v10 }
 0x2a1   : > { %v973_v36 = vadd.f32 %v2063_v10, %v972_v21 }
 0x2a2   : > { %1122 = vrot.lane.b32.xlu0 %v963_v35, %s1768_s21 }
 0x2a3   : > { %v1633_v43 = vpop.f32.mrb[12].mxu0  ;;  %1126 = vrot.lane.b32.xlu1 %v973_v36, %s1768_s21  ;;  %1700 = vtanh.f32 %v973_v36 }
 0x2a4   : > { %v988_v51 = vadd.f32 %v1633_v43, %v2063_v10  ;;  %v982_v52 = vpop.f32.mrb[13].mxu0  ;;  %1702 = vtanh.f32 %v978_v20 }
 0x2a5   : > { %v983_v55 = vadd.f32 %v2063_v10, %v982_v52 }
 0x2a6   : > { %1128 = vrot.lane.b32.xlu0 %v978_v20, %s1768_s21  ;;  %1704 = vtanh.f32 %v988_v51 }
 0x2a7   : > { %v1636_v53 = vpop.f32.mrb[14].mxu0  ;;  %1132 = vrot.lane.b32.xlu1 %v988_v51, %s1768_s21  ;;  %1706 = vtanh.f32 %v983_v55 }
 0x2a8   : > { %v992_v54 = vpop.f32.mrb[15].mxu0  ;;  %v998_v59 = vadd.f32 %v1636_v53, %v2063_v10  ;;  %v1697_v1 = vpop.eup %1696 }
 0x2a9   : > { %v993_v56 = vadd.f32 %v2063_v10, %v992_v54  ;;  %v1225_v2 = vmul.f32 %v1697_v1, %v1850_v12  ;;  %v1699_v6 = vpop.eup %1698  ;;  %v1060_v35 = vmul.f32 1.442695, %v1697_v1 }
 0x2aa   : > { %v1224_v7 = vmul.f32 %v1699_v6, %v1850_v12  ;;  %v1058_v52 = vmul.f32 1.442695, %v1699_v6 }
 0x2ab   : > { %1130 = vrot.lane.b32.xlu1 %v983_v55, %s1768_s21  ;;  %1134 = vrot.lane.b32.xlu0 %v993_v56, %s1768_s21  ;;  %v1639_v57 = vpop.f32.mrb[16].mxu0  ;;  %v1243_v3 = vsel %vm398_vm0, %v1225_v2, 0.0  ;;  %1708 = vtanh.f32 %v993_v56 }
 0x2ac   : > { %v1002_v58 = vpop.f32.mrb[17].mxu0  ;;  %v1240_v8 = vsel %vm398_vm0, %v1224_v7, 0.0  ;;  %v2097_v9 = vadd.f32 %v1639_v57, %v2063_v10  ;;  %1710 = vtanh.f32 %v998_v59 }
 0x2ad   : > { %v2092_v5 = vadd.f32 %v2063_v10, %v1002_v58  ;;  %v1701_v4 = vpop.eup %1700  ;;  %1712 = vpow2.f32 %v1060_v35 }
 0x2ae   : > { %v1226_v63 = vmul.f32 %v1701_v4, %v1850_v12  ;;  %v1703_v43 = vpop.eup %1702  ;;  %v1062_v53 = vmul.f32 1.442695, %v1701_v4  ;;  %1714 = vpow2.f32 %v1058_v52 }
 0x2af   : > { %1136 = vrot.lane.b32.xlu1 %v998_v59, %s1768_s21  ;;  %v2081_v60 = vpop.f32.mrb[18].mxu0  ;;  %v1227_v54 = vmul.f32 %v1703_v43, %v1850_v12  ;;  %v1064_v36 = vmul.f32 1.442695, %v1703_v43 }
 0x2b0   : > { %v1012_v61 = vpop.f32.mrb[19].mxu0  ;;  %v1246_v21 = vsel %vm398_vm0, %v1226_v63, 0.0  ;;  %v2108_v57 = vpop.eup %1704  ;;  %1716 = vpow2.f32 %v1062_v53 }
 0x2b1   : > { %v2110_v20 = vpop.eup %1706  ;;  %v1068_v51 = vmul.f32 1.442695, %v2108_v57  ;;  %v1249_v55 = vsel %vm398_vm0, %v1227_v54, 0.0  ;;  %1718 = vpow2.f32 %v1064_v36  ;;  %v2123_v35 = vadd.f32 %v2063_v10, %v1012_v61 }
 0x2b2   : > { %v1066_v58 = vmul.f32 1.442695, %v2110_v20 }
 0x2b3   : > { %v2083_v62 = vpop.f32.mrb[20].mxu0  ;;  %1720 = vpow2.f32 %v1068_v51 }
 0x2b4   : > { %v2085_v0 = vpop.f32.mrb[21].mxu0  ;;  %1722 = vpow2.f32 %v1066_v58 }
 0x2b5   : > { %v2114_v56 = vpop.eup %1708 }
 0x2b6   : > { %v2117_v59 = vpop.eup %1710  ;;  %v1070_v1 = vmul.f32 1.442695, %v2114_v56 }
 0x2b7   : > { %v2101_v11 = vpop.f32.mrb[22].mxu0  ;;  %v1713_v2 = vpop.eup %1712 }
 0x2b8   : > { %v2103_v32 = vpop.f32.mrb[23].mxu0  ;;  %v1091_v6 = vmul.f32 %v1713_v2, %v1856_v14  ;;  %1724 = vpow2.f32 %v1070_v1  ;;  %v1715_v7 = vpop.eup %1714 }
 0x2b9   : > { %v1090_v43 = vmul.f32 %v1715_v7, %v1853_v13 }
 0x2ba   : > { %v1717_v4 = vpop.eup %1716 }
 0x2bb   : > { %v1719_v52 = vpop.eup %1718  ;;  %v1092_v53 = vmul.f32 %v1717_v4, %v1859_v15 }
 0x2bc   : > { %v1093_v15 = vmul.f32 %v1719_v52, %v1871_v19 }
 0x2bd   : > { %v1721_v54 = vpop.eup %1720 }
 0x2be   : > { %v1723_v1 = vpop.eup %1722 }
 0x2ca   : > { %1244 = vadd.xlane.f32.xlu0 %v1243_v3  ;;  %v1072_v3 = vmul.f32 1.442695, %v2117_v59 }
 0x2cc   : > { %1726 = vpow2.f32 %v1072_v3  ;;  %v1095_v3 = vmul.f32 %v1721_v54, %v1919_v34 }
 0x2cd   : > { %1728 = vtanh.f32 %v2092_v5 }
 0x2ce   : > { %1730 = vtanh.f32 %v2097_v9 }
 0x2d3   : > { %1241 = vadd.xlane.f32.xlu1 %v1240_v8 }
 0x2e0   : > { %1138 = vrot.lane.b32.xlu0 %v2092_v5, %s1768_s21 }
 0x2e4   : > { %1140 = vrot.lane.b32.xlu1 %v2097_v9, %s1768_s21 }
 0x2ff   : > { %1247 = vadd.xlane.f32.xlu0 %v1246_v21 }
 0x308   : > { %1250 = vadd.xlane.f32.xlu1 %v1249_v55  ;;  %v2141_v55 = vadd.f32 %v2081_v60, %v2063_v10 }
 0x310   : > { %v1125_v8 = vpop.permute.xlu0 %1124 }
 0x311   : > { %v1171_v63 = vadd.f32 %v1125_v8, %v1091_v6  ;;  %v1725_v6 = vpop.eup %1724 }
 0x313   : > { %v1193_v21 = vmul.f32 %v1850_v12, %v1171_v63 }
 0x314   : > { %v1123_v14 = vpop.permute.xlu0 %1122 }
 0x315   : > { %v1209_v36 = vadd.f32 %v1193_v21, %v1865_v17  ;;  %v1170_v61 = vadd.f32 %v1123_v14, %v1090_v43  ;;  %v1127_v51 = vpop.permute.xlu1 %1126  ;;  %1142 = vrot.lane.b32.xlu0 %v2123_v35, %s1768_s21  ;;  %v1096_v21 = vmul.f32 %v1725_v6, %v1930_v37  ;;  %v1727_v43 = vpop.eup %1726 }
 0x316   : > { %v1172_v13 = vadd.f32 %v1127_v51, %v1092_v53 }
 0x317   : > { %1289 = vst.msk [vmem:[%s2131_s25 + $0x8] sm:$0xff] %vm398_vm0, %v1209_v36  ;;  %v1192_v58 = vmul.f32 %v1850_v12, %v1170_v61  ;;  %v1097_v61 = vmul.f32 %v1727_v43, %v1959_v45 }
 0x318   : > { %v1194_v17 = vmul.f32 %v1850_v12, %v1172_v13  ;;  %v1129_v2 = vpop.permute.xlu0 %1128 }
 0x319   : > { %v1208_v7 = vadd.f32 %v1192_v58, %v1862_v16  ;;  %v1173_v8 = vadd.f32 %v1129_v2, %v1093_v15  ;;  %v1133_v4 = vpop.permute.xlu1 %1132  ;;  %1144 = vrot.lane.b32.xlu1 %v2141_v55, %s1768_s21  ;;  %v1094_v16 = vmul.f32 %v1723_v1, %v1880_v22  ;;  %v1228_v1 = vmul.f32 %v2110_v20, %v1850_v12 }
 0x31a   : > { %v1210_v60 = vadd.f32 %v1194_v17, %v1868_v18  ;;  %v1175_v63 = vadd.f32 %v1133_v4, %v1095_v3  ;;  %v1023_v17 = vadd.f32 %v2063_v10, %v2085_v0  ;;  %v1028_v20 = vadd.f32 %v2083_v62, %v2063_v10 }
 0x31b   : > { %1288 = vst.msk [vmem:[%s2131_s25] sm:$0xff] %vm398_vm0, %v1208_v7  ;;  %v1195_v19 = vmul.f32 %v1850_v12, %v1173_v8  ;;  %v1252_v45 = vsel %vm398_vm0, %v1228_v1, 0.0 }
 0x31c   : > { %1290 = vst.msk [vmem:[%s2131_s25 + $0x10] sm:$0xff] %vm398_vm0, %v1210_v60  ;;  %v1197_v34 = vmul.f32 %v1850_v12, %v1175_v63  ;;  %v1033_v63 = vadd.f32 %v2063_v10, %v2103_v32 }
 0x31d   : > { %v1211_v52 = vadd.f32 %v1195_v19, %v1902_v28  ;;  %v1131_v18 = vpop.permute.xlu1 %1130  ;;  %v1135_v14 = vpop.permute.xlu0 %1134 }
 0x31e   : > { %v1213_v53 = vadd.f32 %v1197_v34, %v1948_v41  ;;  %v1174_v54 = vadd.f32 %v1131_v18, %v1094_v16  ;;  %v1176_v36 = vadd.f32 %v1135_v14, %v1096_v21  ;;  %v1230_v34 = vmul.f32 %v2114_v56, %v1850_v12 }
 0x31f   : > { %1291 = vst.msk [vmem:[%s2131_s25 + $0x18] sm:$0xff] %vm398_vm0, %v1211_v52 }
 0x320   : > { %1293 = vst.msk [vmem:[%s2131_s25 + $0x28] sm:$0xff] %vm398_vm0, %v1213_v53  ;;  %v1196_v22 = vmul.f32 %v1850_v12, %v1174_v54  ;;  %v1198_v37 = vmul.f32 %v1850_v12, %v1176_v36  ;;  %v1258_v16 = vsel %vm398_vm0, %v1230_v34, 0.0 }
 0x321   : > { %v1137_v51 = vpop.permute.xlu1 %1136 }
 0x322   : > { %v1212_v28 = vadd.f32 %v1196_v22, %v1916_v33  ;;  %v1214_v13 = vadd.f32 %v1198_v37, %v1956_v44  ;;  %v1177_v58 = vadd.f32 %v1137_v51, %v1097_v61  ;;  %v1229_v33 = vmul.f32 %v2108_v57, %v1850_v12 }
 0x324   : > { %1292 = vst.msk [vmem:[%s2131_s25 + $0x20] sm:$0xff] %vm398_vm0, %v1212_v28  ;;  %1294 = vst.msk [vmem:[%s2131_s25 + $0x30] sm:$0xff] %vm398_vm0, %v1214_v13  ;;  %v1199_v41 = vmul.f32 %v1850_v12, %v1177_v58  ;;  %v1255_v44 = vsel %vm398_vm0, %v1229_v33, 0.0 }
 0x326   : > { %v1215_v15 = vadd.f32 %v1199_v41, %v1977_v49  ;;  %v1729_v49 = vpop.eup %1728 }
 0x327   : > { %v1074_v2 = vmul.f32 1.442695, %v1729_v49  ;;  %v1731_v57 = vpop.eup %1730  ;;  %v1232_v21 = vmul.f32 %v1729_v49, %v1850_v12 }
 0x328   : > { %1295 = vst.msk [vmem:[%s2131_s25 + $0x38] sm:$0xff] %vm398_vm0, %v1215_v15  ;;  %v1076_v5 = vmul.f32 1.442695, %v1731_v57 }
 0x329   : > { %1732 = vpow2.f32 %v1074_v2  ;;  %v1264_v56 = vsel %vm398_vm0, %v1232_v21, 0.0 }
 0x32a   : > { %1734 = vpow2.f32 %v1076_v5 }
 0x32b   : > { %1736 = vtanh.f32 %v2123_v35 }
 0x32c   : > { %1738 = vtanh.f32 %v1023_v17 }
 0x32d   : > { %1740 = vtanh.f32 %v1033_v63 }
 0x32e   : > { %1742 = vtanh.f32 %v2141_v55  ;;  %v1231_v55 = vmul.f32 %v2117_v59, %v1850_v12 }
 0x32f   : > { %1744 = vtanh.f32 %v1028_v20 }
 0x330   : > { %v1261_v54 = vsel %vm398_vm0, %v1231_v55, 0.0 }
 0x333   : > { %v1733_v0 = vpop.eup %1732 }
 0x334   : > { %1253 = vadd.xlane.f32.xlu0 %v1252_v45  ;;  %v1098_v62 = vmul.f32 %v1733_v0, %v1883_v23  ;;  %v1735_v8 = vpop.eup %1734 }
 0x335   : > { %v1099_v23 = vmul.f32 %v1735_v8, %v1891_v25  ;;  %v1737_v32 = vpop.eup %1736  ;;  %v1038_v25 = vadd.f32 %v2101_v11, %v2063_v10  ;;  %v1233_v10 = vmul.f32 %v1731_v57, %v1850_v12 }
 0x336   : > { %v1234_v52 = vmul.f32 %v1737_v32, %v1850_v12  ;;  %v1739_v18 = vpop.eup %1738  ;;  %v1078_v1 = vmul.f32 1.442695, %v1737_v32 }
 0x337   : > { %v2226_v14 = vpop.eup %1740  ;;  %1746 = vtanh.f32 %v1038_v25  ;;  %v1236_v53 = vmul.f32 %v1739_v18, %v1850_v12  ;;  %v1267_v59 = vsel %vm398_vm0, %v1233_v10, 0.0  ;;  %v1082_v8 = vmul.f32 1.442695, %v1739_v18 }
 0x338   : > { %v1743_v11 = vpop.eup %1742  ;;  %v1238_v36 = vmul.f32 %v2226_v14, %v1850_v12  ;;  %1748 = vpow2.f32 %v1078_v1 }
 0x339   : > { %v1276_v22 = vsel %vm398_vm0, %v1236_v53, 0.0  ;;  %v1235_v37 = vmul.f32 %v1743_v11, %v1850_v12  ;;  %v1745_v61 = vpop.eup %1744  ;;  %v1080_v33 = vmul.f32 1.442695, %v1743_v11 }
 0x33a   : > { %v1282_v51 = vsel %vm398_vm0, %v1238_v36, 0.0  ;;  %v1237_v13 = vmul.f32 %v1745_v61, %v1850_v12 }
 0x33b   : > { %v1273_v28 = vsel %vm398_vm0, %v1235_v37, 0.0  ;;  %1750 = vpow2.f32 %v1080_v33 }
 0x33c   : > { %v1279_v41 = vsel %vm398_vm0, %v1237_v13, 0.0  ;;  %1752 = vpow2.f32 %v1082_v8 }
 0x33d   : > { %1256 = vadd.xlane.f32.xlu1 %v1255_v44 }
 0x341   : > { %v2240_v58 = vpop.eup %1746 }
 0x342   : > { %v1239_v15 = vmul.f32 %v2240_v58, %v1850_v12  ;;  %v1749_v44 = vpop.eup %1748 }
 0x344   : > { %v1285_v45 = vsel %vm398_vm0, %v1239_v15, 0.0 }
 0x345   : > { %v1751_v5 = vpop.eup %1750 }
 0x34a   : > { %1146 = vrot.lane.b32.xlu0 %v1023_v17, %s1768_s21  ;;  %v1100_v17 = vmul.f32 %v1749_v44, %v1894_v26 }
 0x34e   : > { %1148 = vrot.lane.b32.xlu1 %v1028_v20, %s1768_s21 }
 0x357   : > { %v1245_v9 = vpop.xlane.xlu0 %1244 }
 0x358   : > { %1306 = vst.msk [vmem:[%s2196_s28 + $0x8] sm:$0xff] %vm1304_vm2, %v1245_v9 }
 0x35b   : > { %v1139_v3 = vpop.permute.xlu0 %1138 }
 0x35c   : > { %v1178_v6 = vadd.f32 %v1139_v3, %v1098_v62  ;;  %v1101_v62 = vmul.f32 %v1751_v5, %v1897_v27 }
 0x35e   : > { %v1200_v7 = vmul.f32 %v1850_v12, %v1178_v6 }
 0x360   : > { %v1216_v4 = vadd.f32 %v1200_v7, %v1888_v24  ;;  %v1242_v60 = vpop.xlane.xlu1 %1241 }
 0x361   : > { %1305 = vst.msk [vmem:[%s2196_s28] sm:$0xff] %vm1304_vm2, %v1242_v60 }
 0x362   : > { %1296 = vst.msk [vmem:[%s2131_s25 + $0x40] sm:$0xff] %vm398_vm0, %v1216_v4  ;;  %v1753_v4 = vpop.eup %1752 }
 0x363   : > { %v1102_v27 = vmul.f32 %v1753_v4, %v1911_v31 }
 0x364   : > { %v1141_v19 = vpop.permute.xlu1 %1140 }
 0x365   : > { %v1179_v35 = vadd.f32 %v1141_v19, %v1099_v23 }
 0x367   : > { %v1201_v24 = vmul.f32 %v1850_v12, %v1179_v35 }
 0x369   : > { %v1217_v43 = vadd.f32 %v1201_v24, %v1905_v29  ;;  %1259 = vadd.xlane.f32.xlu0 %v1258_v16  ;;  %v1270_v29 = vsel %vm398_vm0, %v1234_v52, 0.0 }
 0x36b   : > { %1297 = vst.msk [vmem:[%s2131_s25 + $0x48] sm:$0xff] %vm398_vm0, %v1217_v43  ;;  %v1086_v43 = vmul.f32 1.442695, %v2226_v14 }
 0x36d   : > { %1265 = vadd.xlane.f32.xlu0 %v1264_v56 }
 0x371   : > { %1271 = vadd.xlane.f32.xlu0 %v1270_v29 }
 0x372   : > { %1262 = vadd.xlane.f32.xlu1 %v1261_v54 }
 0x375   : > { %1277 = vadd.xlane.f32.xlu0 %v1276_v22 }
 0x376   : > { %1268 = vadd.xlane.f32.xlu1 %v1267_v59 }
 0x379   : > { %1283 = vadd.xlane.f32.xlu0 %v1282_v51 }
 0x37a   : > { %1274 = vadd.xlane.f32.xlu1 %v1273_v28 }
 0x37e   : > { %1280 = vadd.xlane.f32.xlu1 %v1279_v41 }
 0x382   : > { %1286 = vadd.xlane.f32.xlu1 %v1285_v45 }
 0x38c   : > { %v1248_v49 = vpop.xlane.xlu0 %1247 }
 0x38d   : > { %1307 = vst.msk [vmem:[%s2196_s28 + $0x10] sm:$0xff] %vm1304_vm2, %v1248_v49 }
 0x38f   : > { %1150 = vrot.lane.b32.xlu0 %v1033_v63, %s1768_s21 }
 0x390   : > { %v1143_v2 = vpop.permute.xlu0 %1142 }
 0x391   : > { %v1180_v20 = vadd.f32 %v1143_v2, %v1100_v17 }
 0x393   : > { %v1202_v57 = vmul.f32 %v1850_v12, %v1180_v20  ;;  %1152 = vrot.lane.b32.xlu1 %v1038_v25, %s1768_s21 }
 0x395   : > { %v1218_v0 = vadd.f32 %v1202_v57, %v1908_v30  ;;  %v1251_v9 = vpop.xlane.xlu1 %1250  ;;  %v1084_v30 = vmul.f32 1.442695, %v1745_v61 }
 0x396   : > { %1308 = vst.msk [vmem:[%s2196_s28 + $0x18] sm:$0xff] %vm1304_vm2, %v1251_v9 }
 0x397   : > { %1298 = vst.msk [vmem:[%s2131_s25 + $0x50] sm:$0xff] %vm398_vm0, %v1218_v0  ;;  %1754 = vpow2.f32 %v1084_v30 }
 0x398   : > { %1756 = vpow2.f32 %v1086_v43 }
 0x399   : > { %v1145_v3 = vpop.permute.xlu1 %1144 }
 0x39a   : > { %v1181_v6 = vadd.f32 %v1145_v3, %v1101_v62 }
 0x39c   : > { %v1203_v26 = vmul.f32 %v1850_v12, %v1181_v6 }
 0x39e   : > { %v1219_v7 = vadd.f32 %v1203_v26, %v1935_v38 }
 0x3a0   : > { %1299 = vst.msk [vmem:[%s2131_s25 + $0x58] sm:$0xff] %vm398_vm0, %v1219_v7 }
 0x3a1   : > { %v1755_v19 = vpop.eup %1754 }
 0x3a2   : > { %v1103_v24 = vmul.f32 %v1755_v19, %v1943_v40  ;;  %v1757_v55 = vpop.eup %1756 }
 0x3a3   : > { %v1104_v53 = vmul.f32 %v1757_v55, %v1951_v42 }
 0x3c1   : > { %v1254_v60 = vpop.xlane.xlu0 %1253 }
 0x3c2   : > { %1309 = vst.msk [vmem:[%s2196_s28 + $0x20] sm:$0xff] %vm1304_vm2, %v1254_v60 }
 0x3c5   : > { %v1147_v63 = vpop.permute.xlu0 %1146 }
 0x3c6   : > { %v1182_v23 = vadd.f32 %v1147_v63, %v1102_v27 }
 0x3c8   : > { %v1204_v38 = vmul.f32 %v1850_v12, %v1182_v23 }
 0x3ca   : > { %v1220_v34 = vadd.f32 %v1204_v38, %v1940_v39  ;;  %v1257_v35 = vpop.xlane.xlu1 %1256 }
 0x3cb   : > { %1310 = vst.msk [vmem:[%s2196_s28 + $0x28] sm:$0xff] %vm1304_vm2, %v1257_v35 }
 0x3cc   : > { %1300 = vst.msk [vmem:[%s2131_s25 + $0x60] sm:$0xff] %vm398_vm0, %v1220_v34 }
 0x3ce   : > { %v1149_v16 = vpop.permute.xlu1 %1148 }
 0x3cf   : > { %v1183_v31 = vadd.f32 %v1149_v16, %v1103_v24 }
 0x3d1   : > { %v1205_v21 = vmul.f32 %v1850_v12, %v1183_v31 }
 0x3d3   : > { %v1221_v32 = vadd.f32 %v1205_v21, %v1964_v46  ;;  %v1088_v46 = vmul.f32 1.442695, %v2240_v58 }
 0x3d5   : > { %1301 = vst.msk [vmem:[%s2131_s25 + $0x68] sm:$0xff] %vm398_vm0, %v1221_v32  ;;  %1758 = vpow2.f32 %v1088_v46 }
 0x3df   : > { %v1759_v22 = vpop.eup %1758 }
 0x3e0   : > { %v1105_v61 = vmul.f32 %v1759_v22, %v1972_v48 }
 0x3f6   : > { %v1260_v39 = vpop.xlane.xlu0 %1259 }
 0x3f7   : > { %1311 = vst.msk [vmem:[%s2196_s28 + $0x30] sm:$0xff] %vm1304_vm2, %v1260_v39 }
 0x3fa   : > { %v1266_v25 = vpop.xlane.xlu0 %1265 }
 0x3fb   : > { %1313 = vst.msk [vmem:[%s2196_s28 + $0x40] sm:$0xff] %vm1304_vm2, %v1266_v25 }
 0x3fe   : > { %v1272_v40 = vpop.xlane.xlu0 %1271 }
 0x3ff   : > { %1315 = vst.msk [vmem:[%s2196_s28 + $0x50] sm:$0xff] %vm1304_vm2, %v1272_v40  ;;  %v1263_v56 = vpop.xlane.xlu1 %1262 }
 0x400   : > { %1312 = vst.msk [vmem:[%s2196_s28 + $0x38] sm:$0xff] %vm1304_vm2, %v1263_v56 }
 0x402   : > { %v1278_v52 = vpop.xlane.xlu0 %1277 }
 0x403   : > { %1317 = vst.msk [vmem:[%s2196_s28 + $0x60] sm:$0xff] %vm1304_vm2, %v1278_v52  ;;  %v1269_v18 = vpop.xlane.xlu1 %1268 }
 0x404   : > { %1314 = vst.msk [vmem:[%s2196_s28 + $0x48] sm:$0xff] %vm1304_vm2, %v1269_v18 }
 0x406   : > { %v1284_v14 = vpop.xlane.xlu0 %1283 }
 0x407   : > { %1319 = vst.msk [vmem:[%s2196_s28 + $0x70] sm:$0xff] %vm1304_vm2, %v1284_v14  ;;  %v1275_v29 = vpop.xlane.xlu1 %1274 }
 0x408   : > { %1316 = vst.msk [vmem:[%s2196_s28 + $0x58] sm:$0xff] %vm1304_vm2, %v1275_v29 }
 0x40a   : > { %v1151_v54 = vpop.permute.xlu0 %1150 }
 0x40b   : > { %v1184_v10 = vadd.f32 %v1151_v54, %v1104_v53  ;;  %v1281_v11 = vpop.xlane.xlu1 %1280 }
 0x40c   : > { %1318 = vst.msk [vmem:[%s2196_s28 + $0x68] sm:$0xff] %vm1304_vm2, %v1281_v11 }
 0x40d   : > { %v1206_v36 = vmul.f32 %v1850_v12, %v1184_v10 }
 0x40f   : > { %v1222_v59 = vadd.f32 %v1206_v36, %v1969_v47  ;;  %v1287_v37 = vpop.xlane.xlu1 %1286 }
 0x410   : > { %1320 = vst.msk [vmem:[%s2196_s28 + $0x78] sm:$0xff] %vm1304_vm2, %v1287_v37 }
 0x411   : > { %1302 = vst.msk [vmem:[%s2131_s25 + $0x70] sm:$0xff] %vm398_vm0, %v1222_v59 }
 0x413   : > { %v1153_v51 = vpop.permute.xlu1 %1152 }
 0x414   : > { %v1185_v42 = vadd.f32 %v1153_v51, %v1105_v61 }
 0x416   : > { %v1207_v28 = vmul.f32 %v1850_v12, %v1185_v42 }
 0x418   : > { %v1223_v13 = vadd.f32 %v1207_v28, %v1984_v50 }
 0x41a   : > { %1303 = vst.msk [vmem:[%s2131_s25 + $0x78] sm:$0xff] %vm398_vm0, %v1223_v13 }
 0x41b PF: > { %s20_s30 = sadd.s32 1, %s1766_s30  }
 0x41c   : > { %p17_p4 = scmp.ge.s32.totalorder %s20_s30, 6  }
 0x41e   :  { %19 = sbr.rel (!%p17_p4) target bundleno = 1 (0x1), region = 94 }

</bundles_post_ra>
